<compile_context>
chip_gen: v6e
topology: v6e:2x2x1
jax: 0.10.0
libtpu: 0.0.40
codegen_flags: <defaults>
</compile_context>

<pallas_src>
import numpy as np
import jax
import jax.numpy as jnp
from jax import lax
from jax.experimental import pallas as pl
from jax.experimental.pallas import tpu as pltpu


# ----------------------------------------------------------------------------
# Host-side base-anchor construction (numpy, identical math to the reference).
# ----------------------------------------------------------------------------

def generate_anchors(base_size=16, ratios=None, scales=None):
    if ratios is None:
        ratios = np.array([0.5, 1, 2])
    if scales is None:
        scales = np.array([2 ** 0, 2 ** (1.0 / 3.0), 2 ** (2.0 / 3.0)])
    num_anchors = len(ratios) * len(scales)
    anchors = np.zeros((num_anchors, 4))
    anchors[:, 2:] = base_size * np.tile(scales, (2, len(ratios))).T
    areas = anchors[:, 2] * anchors[:, 3]
    anchors[:, 2] = np.sqrt(areas / np.repeat(ratios, len(scales)))
    anchors[:, 3] = anchors[:, 2] * np.repeat(ratios, len(scales))
    anchors[:, 0::2] -= np.tile(anchors[:, 2] * 0.5, (2, 1)).T
    anchors[:, 1::2] -= np.tile(anchors[:, 3] * 0.5, (2, 1)).T
    return anchors


def _shift_np(shape, stride, anchors):
    # numpy reference (used only for the correctness check in __main__)
    shift_x = (np.arange(0, shape[1]) + 0.5) * stride
    shift_y = (np.arange(0, shape[0]) + 0.5) * stride
    shift_x, shift_y = np.meshgrid(shift_x, shift_y)
    shifts = np.vstack((shift_x.ravel(), shift_y.ravel(),
                        shift_x.ravel(), shift_y.ravel())).transpose()
    A = anchors.shape[0]
    K = shifts.shape[0]
    all_anchors = (anchors.reshape((1, A, 4)) +
                   shifts.reshape((1, K, 4)).transpose((1, 0, 2)))
    return all_anchors.reshape((K * A, 4))


def _np_reference(image_shape, levels, strides, sizes, ratios, scales):
    image_shape = np.array(image_shape)
    level_shapes = [(image_shape + 2 ** x - 1) // (2 ** x) for x in levels]
    all_anchors = np.zeros((0, 4)).astype(np.float32)
    for idx in range(len(levels)):
        anchors = generate_anchors(base_size=sizes[idx], ratios=ratios, scales=scales)
        shifted = _shift_np(level_shapes[idx], strides[idx], anchors)
        all_anchors = np.append(all_anchors, shifted, axis=0)
    return np.expand_dims(all_anchors, axis=0).astype(np.float32)


# ----------------------------------------------------------------------------
# Pallas kernel: shift every base anchor to every feature-grid cell.
# Output block (1, 36, TK): row r = a*4 + c, lane = flattened cell index k.
#   out[l, a*4+c, k] = base[l, a*4+c] + ((k %  W_l)+0.5)*stride_l   if c in {0,2}
#                                       ((k // W_l)+0.5)*stride_l   if c in {1,3}
# ----------------------------------------------------------------------------

def _anchor_shift_kernel(lvl_ref, ktile_ref, widths_ref, strides_ref,
                         base_ref, out_ref):
    g = pl.program_id(0)
    lvl = lvl_ref[g]                                  # pyramid level of this step
    ktile = ktile_ref[g]                              # cell-tile index within level
    _, R, TK = out_ref.shape

    w_f = widths_ref[lvl].astype(jnp.float32)         # feature-grid width of level
    s_f = strides_ref[lvl].astype(jnp.float32)        # pixel stride of level
    k0 = (ktile * TK).astype(jnp.float32)             # first flattened cell index

    # Flattened cell indices of this tile, computed once at (1, 1, TK).
    kf = lax.broadcasted_iota(jnp.int32, (1, 1, TK), 2).astype(jnp.float32) + k0
    # row = k // W, col = k % W.  Float trick (+0.5 before the divide) keeps
    # floor() exact for realistic grid sizes (k + 0.5 < 2^23, margin >> ulp).
    rowf = jnp.floor((kf + 0.5) / w_f)
    colf = kf - rowf * w_f
    xs = (colf + 0.5) * s_f                           # per-cell x shift (1,1,TK)
    ys = (rowf + 0.5) * s_f                           # per-cell y shift (1,1,TK)

    # output row r = a*4 + c ; coords {0,2} (x1,x2) take the x shift,
    # coords {1,3} (y1,y2) take the y shift.  a*4 is even, so c parity == r parity.
    ridx = lax.broadcasted_iota(jnp.int32, (1, R, TK), 1)
    xs_b = jnp.broadcast_to(xs, (1, R, TK))           # sublane broadcast (cheap)
    ys_b = jnp.broadcast_to(ys, (1, R, TK))
    shift_v = jnp.where((ridx & 1) == 0, xs_b, ys_b)

    out_ref[...] = (base_ref[...] + shift_v).astype(out_ref.dtype)


# ----------------------------------------------------------------------------
# Module wrapper (mirrors the PyTorch Anchors module)
# ----------------------------------------------------------------------------

class Anchors:
    def __init__(self, pyramid_levels=None, strides=None, sizes=None,
                 ratios=None, scales=None):
        self.pyramid_levels = [3, 4, 5, 6, 7] if pyramid_levels is None else pyramid_levels
        if strides is None:
            self.strides = [2 ** x for x in self.pyramid_levels]
        if sizes is None:
            self.sizes = [2 ** (x + 2) for x in self.pyramid_levels]
        if ratios is None:
            self.ratios = np.array([0.5, 1, 2])
        if scales is None:
            self.scales = np.array([2 ** 0, 2 ** (1.0 / 3.0), 2 ** (2.0 / 3.0)])
        self.num_per_cell = len(self.scales) * len(self.ratios)

    def forward(self, image_shape, device=None):
        del device  # jax arrays live on the default (TPU) device
        image_shape = np.array(image_shape)
        levels = self.pyramid_levels
        L = len(levels)
        A = self.num_per_cell            # 9
        R = A * 4                        # 36 output rows per cell

        level_shapes = [(image_shape + 2 ** x - 1) // (2 ** x) for x in levels]
        widths = np.array([int(s[1]) for s in level_shapes], np.int32)
        Ks = [int(s[0]) * int(s[1]) for s in level_shapes]
        strides_i = np.array(self.strides, np.int32)

        # (L, 36, 1) base anchors -- host numpy, exactly like the reference.
        base = np.stack([
            generate_anchors(base_size=self.sizes[i], ratios=self.ratios,
                             scales=self.scales).reshape(R)
            for i in range(L)]).astype(np.float32)[..., None]

        # Lane tile: biggest power-of-two chunk up to 512 cells per grid step
        # (multiple of 128 lanes -> unmasked stores, fewer grid steps).
        TK = max(128, min(512, pl.next_power_of_2(max(Ks))))
        tiles_per_level = [pl.cdiv(k, TK) for k in Ks]
        kpad = max(tiles_per_level) * TK

        # Compressed 1-D grid: one step per (level, cell-tile) actually needed.
        lvl_ids = np.concatenate(
            [np.full(t, i, np.int32) for i, t in enumerate(tiles_per_level)])
        ktile_ids = np.concatenate(
            [np.arange(t, dtype=np.int32) for t in tiles_per_level])
        G = int(lvl_ids.shape[0])

        cost = pl.CostEstimate(
            flops=G * R * TK * 6,
            transcendentals=0,
            bytes_accessed=G * R * TK * 4 + base.size * 4)

        out = pl.pallas_call(
            _anchor_shift_kernel,
            grid_spec=pltpu.PrefetchScalarGridSpec(
                num_scalar_prefetch=4,            # lvl_ids, ktile_ids, widths, strides
                grid=(G,),
                in_specs=[pl.BlockSpec(
                    (1, R, 1), lambda g, lv, kt, w, s: (lv[g], 0, 0))],
                out_specs=pl.BlockSpec(
                    (1, R, TK), lambda g, lv, kt, w, s: (lv[g], 0, kt[g])),
            ),
            out_shape=jax.ShapeDtypeStruct((L, R, kpad), jnp.float32),
            compiler_params=pltpu.CompilerParams(
                dimension_semantics=("parallel",)),
            cost_estimate=cost,
        )(jnp.asarray(lvl_ids), jnp.asarray(ktile_ids),
          jnp.asarray(widths), jnp.asarray(strides_i), jnp.asarray(base))

        # Reassemble the reference (1, sum_l K_l*A, 4) layout.  Layout plumbing
        # only: one transpose of the padded slab, then per-level slice + concat.
        out4 = jnp.transpose(out.reshape(L, A, 4, kpad), (0, 3, 1, 2))  # (L,kpad,A,4)
        per_level = [out4[i, :Ks[i]].reshape(Ks[i] * A, 4) for i in range(L)]
        return jnp.concatenate(per_level, axis=0)[None].astype(jnp.float32)

    __call__ = forward


# ----------------------------------------------------------------------------
# Demo / correctness check
# ----------------------------------------------------------------------------

if __name__ == "__main__":
    key = jax.random.PRNGKey(0)
    # Small NCHW image batch; Anchors.forward only consumes the spatial shape.
    img = jax.random.normal(key, (2, 3, 128, 128), jnp.float32)
    image_shape = tuple(img.shape[2:])

    anchors_mod = Anchors()
    boxes = anchors_mod(image_shape)
    boxes = jax.block_until_ready(boxes)

    ref = _np_reference(image_shape, anchors_mod.pyramid_levels,
                        anchors_mod.strides, anchors_mod.sizes,
                        anchors_mod.ratios, anchors_mod.scales)

    assert boxes.shape == ref.shape, (boxes.shape, ref.shape)
    assert bool(jnp.all(jnp.isfinite(boxes)))
    np.testing.assert_allclose(np.asarray(boxes), ref, rtol=1e-5, atol=1e-3)
    print("KERNEL_OK")
</pallas_src>

<mosaic_0001>
module attributes {stable_mosaic.version = 11 : i64} {
  func.func @_anchor_shift_kernel(%arg0: i32, %arg1: memref<5xi32, #tpu.memory_space<smem>>, %arg2: memref<5xi32, #tpu.memory_space<smem>>, %arg3: memref<5xi32, #tpu.memory_space<smem>>, %arg4: memref<5xi32, #tpu.memory_space<smem>>, %arg5: memref<1x36x1xf32, #tpu.memory_space<vmem>>, %arg6: memref<1x36x256xf32, #tpu.memory_space<vmem>>) attributes {dimension_semantics = [#tpu.dimension_semantics<parallel>], iteration_bounds = array<i64: 5>, scalar_prefetch = 4 : i64, scratch_operands = 0 : i64, tpu.core_type = #tpu.core_type<tc>, window_params = [{transform_indices = @transform_0, window_bounds = array<i64: 1, 36, 1>}, {transform_indices = @transform_1, window_bounds = array<i64: 1, 36, 256>}]} {
    %0 = arith.index_cast %arg0 : i32 to index
    %1 = memref.load %arg1[%0] : memref<5xi32, #tpu.memory_space<smem>>
    %2 = arith.index_cast %arg0 : i32 to index
    %3 = memref.load %arg2[%2] : memref<5xi32, #tpu.memory_space<smem>>
    %4 = arith.index_cast %1 : i32 to index
    %5 = memref.load %arg3[%4] : memref<5xi32, #tpu.memory_space<smem>>
    %6 = arith.sitofp %5 : i32 to f32
    %7 = arith.index_cast %1 : i32 to index
    %8 = memref.load %arg4[%7] : memref<5xi32, #tpu.memory_space<smem>>
    %9 = arith.sitofp %8 : i32 to f32
    %c256_i32 = arith.constant 256 : i32
    %10 = arith.muli %3, %c256_i32 : i32
    %11 = arith.sitofp %10 : i32 to f32
    %12 = tpu.iota {dimensions = array<i32: 2>} : vector<1x1x256xi32>
    %13 = arith.sitofp %12 : vector<1x1x256xi32> to vector<1x1x256xf32>
    %14 = vector.broadcast %11 : f32 to vector<1x1x256xf32>
    %15 = arith.addf %13, %14 : vector<1x1x256xf32>
    %cst = arith.constant 5.000000e-01 : f32
    %16 = vector.broadcast %cst : f32 to vector<1x1x256xf32>
    %17 = arith.addf %15, %16 : vector<1x1x256xf32>
    %18 = vector.broadcast %6 : f32 to vector<1x1x256xf32>
    %19 = arith.divf %17, %18 : vector<1x1x256xf32>
    %20 = math.floor %19 : vector<1x1x256xf32>
    %21 = vector.broadcast %6 : f32 to vector<1x1x256xf32>
    %22 = arith.mulf %20, %21 : vector<1x1x256xf32>
    %23 = arith.subf %15, %22 : vector<1x1x256xf32>
    %cst_0 = arith.constant 5.000000e-01 : f32
    %24 = vector.broadcast %cst_0 : f32 to vector<1x1x256xf32>
    %25 = arith.addf %23, %24 : vector<1x1x256xf32>
    %26 = vector.broadcast %9 : f32 to vector<1x1x256xf32>
    %27 = arith.mulf %25, %26 : vector<1x1x256xf32>
    %cst_1 = arith.constant 5.000000e-01 : f32
    %28 = vector.broadcast %cst_1 : f32 to vector<1x1x256xf32>
    %29 = arith.addf %20, %28 : vector<1x1x256xf32>
    %30 = vector.broadcast %9 : f32 to vector<1x1x256xf32>
    %31 = arith.mulf %29, %30 : vector<1x1x256xf32>
    %32 = tpu.iota {dimensions = array<i32: 1>} : vector<1x36x256xi32>
    %33 = vector.shape_cast %27 : vector<1x1x256xf32> to vector<1x1x256xf32>
    %34 = vector.broadcast %33 : vector<1x1x256xf32> to vector<1x36x256xf32>
    %35 = vector.shape_cast %31 : vector<1x1x256xf32> to vector<1x1x256xf32>
    %36 = vector.broadcast %35 : vector<1x1x256xf32> to vector<1x36x256xf32>
    %c1_i32 = arith.constant 1 : i32
    %37 = vector.broadcast %c1_i32 : i32 to vector<1x36x256xi32>
    %38 = arith.andi %32, %37 : vector<1x36x256xi32>
    %c0_i32 = arith.constant 0 : i32
    %39 = vector.broadcast %c0_i32 : i32 to vector<1x36x256xi32>
    %40 = arith.cmpi eq, %38, %39 : vector<1x36x256xi32>
    %41 = arith.select %40, %34, %36 : vector<1x36x256xi1>, vector<1x36x256xf32>
    %c0 = arith.constant 0 : index
    %c0_2 = arith.constant 0 : index
    %c0_3 = arith.constant 0 : index
    %42 = vector.load %arg5[%c0, %c0_2, %c0_3] : memref<1x36x1xf32, #tpu.memory_space<vmem>>, vector<1x36x1xf32>
    %43 = vector.broadcast %42 : vector<1x36x1xf32> to vector<1x36x256xf32>
    %44 = arith.addf %43, %41 : vector<1x36x256xf32>
    %c0_4 = arith.constant 0 : index
    %c0_5 = arith.constant 0 : index
    %c0_6 = arith.constant 0 : index
    %45 = vector.load %arg6[%c0_4, %c0_5, %c0_6] : memref<1x36x256xf32, #tpu.memory_space<vmem>>, vector<1x36x256xf32>
    tpu.vector_store %arg6[%c0_4, %c0_5, %c0_6], %44 {strides = array<i32>} : memref<1x36x256xf32, #tpu.memory_space<vmem>>, vector<1x36x256xf32>,
    return
  }
  func.func @transform_0(%arg0: i32, %arg1: memref<5xi32, #tpu.memory_space<smem>>, %arg2: memref<5xi32, #tpu.memory_space<smem>>, %arg3: memref<5xi32, #tpu.memory_space<smem>>, %arg4: memref<5xi32, #tpu.memory_space<smem>>) -> (i32, i32, i32) {
    %0 = arith.index_cast %arg0 : i32 to index
    %1 = memref.load %arg1[%0] : memref<5xi32, #tpu.memory_space<smem>>
    %c0_i32 = arith.constant 0 : i32
    %c0_i32_0 = arith.constant 0 : i32
    %c0_i32_1 = arith.constant 0 : i32
    return %1, %c0_i32, %c0_i32_0 : i32, i32, i32
  }
  func.func @transform_1(%arg0: i32, %arg1: memref<5xi32, #tpu.memory_space<smem>>, %arg2: memref<5xi32, #tpu.memory_space<smem>>, %arg3: memref<5xi32, #tpu.memory_space<smem>>, %arg4: memref<5xi32, #tpu.memory_space<smem>>) -> (i32, i32, i32) {
    %0 = arith.index_cast %arg0 : i32 to index
    %1 = memref.load %arg1[%0] : memref<5xi32, #tpu.memory_space<smem>>
    %2 = arith.index_cast %arg0 : i32 to index
    %3 = memref.load %arg2[%2] : memref<5xi32, #tpu.memory_space<smem>>
    %c0_i32 = arith.constant 0 : i32
    %c0_i32_0 = arith.constant 0 : i32
    return %1, %c0_i32, %3 : i32, i32, i32
  }
}

</mosaic_0001>

<bundles_post_ra>
// kernel: tpu_custom_call.1
= control target key start
LH: loop header
LB: loop body
LE: loop exit
PB: predicated region body
PF: predicated region fallthrough
CT: control target
= control target key end

     0   :  { %s739_s0 = inlined_call_operand.vmem [shape: s32[5], index: 0, kind: input, shape index: {}]   ;;  %s740_s4 = inlined_call_operand.vmem [shape: f32[5,36,1], index: 4, kind: input, shape index: {}]   ;;  %s741_s5 = inlined_call_operand.hbm [shape: f32[5,36,256], index: 5, kind: output, shape index: {}]   ;;  %s742_s1 = inlined_call_operand.vmem [shape: s32[5], index: 1, kind: input, shape index: {}]   ;;  %s743_s2 = inlined_call_operand.vmem [shape: s32[5], index: 2, kind: input, shape index: {}]   ;;  %s744_s3 = inlined_call_operand.vmem [shape: s32[5], index: 3, kind: input, shape index: {}]  }
   0x1   :  { %s10_s20 = sshll.u32 %s739_s0, 4  ;;  %s14_s23 = sshll.u32 %s742_s1, 4  ;;  %s11_s20 = int_to_ptr.vmem [resolvable:$true] %s10_s20  ;;  %s15_s23 = int_to_ptr.vmem [resolvable:$true] %s14_s23 }
   0x2   :  { %s416_s24 = scalar_lea.vmem %s11_s20, 16  ;;  %p421_p1 = scmp.lt.s32.totalorder %s11_s20, %s11_s20 }
   0x3   :  { %p417_p0 = scmp.ne.s32.totalorder %s11_s20, %s416_s24  ;;  %p422_p2 = scmp.lt.s32.totalorder %s416_s24, %s416_s24 }
   0x5   :  { %p423_p3 = por %p422_p2, %p421_p1 }
   0x7   :  { %p424_p4 = pnand %p423_p3, %p417_p0 }
   0x9   :  { %427 = shalt.err (!%p424_p4)  }
   0xa   :  { %s528_s25 = smov [#allocation3]   ;;  %s428_s26 = scalar_lea.vmem %s15_s23, 16 }
   0xb   :  { %13 = dma.vmem_to_smem %s11_s20, 16, %s528_s25, [#allocation2] }
   0xc   :  { %p429_p5 = scmp.ne.s32.totalorder %s15_s23, %s428_s26  ;;  %p433_p6 = scmp.lt.s32.totalorder %s15_s23, %s15_s23 }
   0xd   :  { %p434_p7 = scmp.lt.s32.totalorder %s428_s26, %s428_s26 }
   0xf   :  { %p435_p8 = por %p434_p7, %p433_p6 }
  0x11   :  { %p436_p9 = pnand %p435_p8, %p429_p5 }
  0x13   :  { %439 = shalt.err (!%p436_p9)  }
  0x14   :  { %s529_s0 = smov [#allocation4]   ;;  %s18_s28 = sshll.u32 %s743_s2, 4  ;;  %s19_s28 = int_to_ptr.vmem [resolvable:$true] %s18_s28 }
  0x15   :  { %17 = dma.vmem_to_smem %s15_s23, 16, %s529_s0, [#allocation2] }
  0x16   :  { %s22_s6 = sshll.u32 %s744_s3, 4  ;;  %s440_s7 = scalar_lea.vmem %s19_s28, 16  ;;  %s23_s6 = int_to_ptr.vmem [resolvable:$true] %s22_s6 }
  0x17   :  { %p441_p10 = scmp.ne.s32.totalorder %s19_s28, %s440_s7  ;;  %p445_p11 = scmp.lt.s32.totalorder %s19_s28, %s19_s28 }
  0x18   :  { %p446_p12 = scmp.lt.s32.totalorder %s440_s7, %s440_s7 }
  0x1a   :  { %p447_p13 = por %p446_p12, %p445_p11 }
  0x1c   :  { %p448_p0 = pnand %p447_p13, %p441_p10 }
  0x1e   :  { %451 = shalt.err (!%p448_p0)  }
  0x1f   :  { %s530_s8 = smov [#allocation5]   ;;  %s452_s9 = scalar_lea.vmem %s23_s6, 16 }
  0x20   :  { %21 = dma.vmem_to_smem %s19_s28, 16, %s530_s8, [#allocation2] }
  0x21   :  { %p453_p1 = scmp.ne.s32.totalorder %s23_s6, %s452_s9  ;;  %p457_p2 = scmp.lt.s32.totalorder %s23_s6, %s23_s6 }
  0x22   :  { %p458_p3 = scmp.lt.s32.totalorder %s452_s9, %s452_s9 }
  0x24   :  { %p459_p4 = por %p458_p3, %p457_p2 }
  0x26   :  { %p460_p5 = pnand %p459_p4, %p453_p1 }
  0x28   :  { %463 = shalt.err (!%p460_p5)  }
  0x29   :  { %s531_s2 = smov [#allocation6]  }
  0x2a   :  { %25 = dma.vmem_to_smem %s23_s6, 16, %s531_s2, [#allocation2] }
  0x2b   :  { %506 = dma.done.wait [#allocation2], 64 }
  0x2c   :  { %507 = vsyncadd [#allocation2], 4294967232 }
  0x2d   :  { %27 = sfence }
  0x2e   :  { %28 = vsyncpa [#allocation8], 0 }
  0x2f   :  { %30 = vsyncpa [#allocation8 + $0x1], 0  ;;  %s578_s3 = smov 0   ;;  %s580_s10 = smov 0  }
  0x30   :  { %s582_s11 = smov 0   ;;  %s584_s12 = smov 0  }
  0x31 LB: > { %s599_s13 = sadd.s32 4294967295, %s526_s12   ;;  %s602_s14 = sadd.s32 1, %s526_s12   ;;  %s526_s12 = sphi %s584_s12, %s760_s12   ;;  %s522_s11 = sphi %s582_s11, %s759_s11   ;;  %s518_s10 = sphi %s580_s10, %s758_s10   ;;  %s514_s3 = sphi %s578_s3, %s757_s3  }
  0x32   : > { %s68_s15 = sld [smem:[#allocation3 + %s526_s12]]  ;;  %s349_s16 = sadd.s32 4294967294, %s526_s12  }
  0x33   : > { %s69_s17 = sld [smem:[#allocation4 + %s526_s12]]  ;;  %p87_p6 = scmp.ne.s32.totalorder %s522_s11, %s518_s10 }
  0x34   : > { %s70_s18 = sld [smem:[#allocation3 + %s602_s14]]  ;;  %p88_p7 = scmp.eq.s32.totalorder %s599_s13, 4 }
  0x35   : > { %s71_s19 = sld [smem:[#allocation4 + %s602_s14]]  ;;  %p93_p8 = scmp.ne.s32.totalorder %s518_s10, %s514_s3 }
  0x36   : > { %p94_p9 = scmp.eq.s32.totalorder %s349_s16, 4  ;;  %p614_p10 = por %p88_p7, %p87_p6 }
  0x37   : > { %p352_p11 = scmp.ge.s32.totalorder %s526_s12, 1  ;;  %p122_p13 = scmp.lt.s32.totalorder %s526_s12, 6 }
  0x38   : > { %p619_p12 = por %p94_p9, %p93_p8  ;;  %s77_s25 = sadd.s32 1, %s522_s11 }
  0x39   : > { %p123_p0 = pnand %p352_p11, %p122_p13 }
  0x3a   : > { %s72_s22 = ssub.s32 %s68_s15, %s70_s18  ;;  %s143_s0 = sld [smem:[#allocation3 + %s599_s13]] (!%p123_p0) }
  0x3b   : > { %s73_s23 = ssub.s32 %s69_s17, %s71_s19  ;;  %126 = sbr.rel (%p123_p0) target bundleno = 219 (0xdb), region = 24 }
  0x3c   : > { %s74_s24 = sor.u32 %s73_s23, %s72_s22  ;;  %s153_s30 = sld [smem:[#allocation3 + %s599_s13]] (!%p123_p0) }
  0x3d   : > { %p75_p1 = scmp.eq.s32.totalorder %s74_s24, 0  ;;  %s154_s7 = sld [smem:[#allocation4 + %s599_s13]] (!%p123_p0) }
  0x3e   : > { %s140_s23 = sand.u32 (!%p123_p0), 1, %s518_s10  }
  0x3f   : > { %s626_s26 = scalar_select %p75_p1, %s522_s11, %s77_s25  }
  0x40   : > { %v532_v0 = vmov 0   ;;  %p144_p2 = scmp.lt.s32.totalorder %s143_s0, 4  ;;  %v161_v6 = vlaneseq  ;;  %s764_s13 = smov (!%p614_p10, %s599_s13), 0 }
  0x41   : > { %413 = vset.pattern.permute.xlu1 %v532_v0  ;;  %412 = vset.pattern.permute.xlu0 %v532_v0  ;;  %s362_s17 = scalar_select %p614_p10, [#allocation3], [#allocation9] }
  0x42   : > { %s762_s0 = smov (!%p144_p2, %s143_s0), 4  ;;  %s155_s6 = sld [smem:[#allocation5 + %s153_s30]]  ;;  %v162_v7 = vand.u32 127, %v161_v6  ;;  %v191_v24 = vshrl.u32 %v161_v6, 7 }
  0x43   : > { %s360_s1 = smul.u32 40, %s762_s0  ;;  %s354_s9 = sshll.u32 %s154_s7, 8 }
  0x44   : > { %v163_v9 = vadd.s32 128, %v162_v7  ;;  %s160_s2 = scvt.s32.f32 %s354_s9  ;;  %v164_v10 = vcvt.s32.f32 %v162_v7  ;;  %s157_s15 = sld [smem:[#allocation6 + %s153_s30]]  ;;  %v193_v25 = vadd.s32 16, %v191_v24  ;;  %v196_v34 = vand.u32 1, %v191_v24 }
  0x45   : > { %s148_s29 = scalar_lea.vmem %s740_s4, %s360_s1  ;;  %v194_v35 = vadd.s32 24, %v191_v24  ;;  %v192_v36 = vadd.s32 8, %v191_v24  ;;  %s641_s19 = sld [smem:[%s362_s17 + %s764_s13]]  ;;  %v195_v45 = vadd.s32 32, %v191_v24 }
  0x46   : > { %v218_v1 = vld [vmem:[%s148_s29 + $0x10] sm:$0xff]  ;;  %v216_v2 = vld [vmem:[%s148_s29] sm:$0xff]  ;;  %v219_v3 = vld [vmem:[%s148_s29 + $0x18] sm:$0xff]  ;;  %v165_v11 = vcvt.s32.f32 %v163_v9  ;;  %v166_v12 = vstv %s160_s2  ;;  %s364_s18 = scalar_select %p614_p10, [#allocation4], [#allocation10]  ;;  %v198_v28 = vand.u32 1, %v193_v25 }
  0x47   : > { %233 = vperm.xlu1 %413, %v218_v1   ;;  %223 = vperm.xlu0 %412, %v216_v2   ;;  %v217_v4 = vld [vmem:[%s148_s29 + $0x8] sm:$0xff]  ;;  %v220_v5 = vld [vmem:[%s148_s29 + $0x20] sm:$0xf]  ;;  %v167_v13 = vadd.f32 %v166_v12, %v164_v10  ;;  %vm650_vm1 = vcmp.eq.s32.totalorder %v196_v34, 0  ;;  %v199_v43 = vand.u32 1, %v194_v35  ;;  %v197_v44 = vand.u32 1, %v192_v36 }
  0x48   : > { %s156_s8 = scvt.s32.f32 %s155_s6  ;;  %v168_v14 = vadd.f32 %v166_v12, %v165_v11  ;;  %s643_s22 = sld [smem:[%s364_s18 + %s764_s13]]  ;;  %vm645_vm0 = vcmp.eq.s32.totalorder %v198_v28, 0  ;;  %v200_v52 = vand.u32 1, %v195_v45 }
  0x49   : > { %v169_v15 = vadd.f32 0.5, %v167_v13  ;;  %s359_s13 = smul.u32 80, %s140_s23  ;;  %vm664_vm2 = vcmp.eq.s32.totalorder %v199_v43, 0  ;;  %vm668_vm3 = vcmp.eq.s32.totalorder %v197_v44, 0  ;;  %s699_s7 = scalar_lea.sflag [#allocation8], %s140_s23 }
  0x4a   : > { %v171_v8 = vstv %s156_s8  ;;  %v170_v16 = vadd.f32 0.5, %v168_v14  ;;  %s158_s16 = scvt.s32.f32 %s157_s15  ;;  %vm682_vm4 = vcmp.eq.s32.totalorder %v200_v52, 0  ;;  %s533_s9 = smov [#allocation7]  }
  0x4b   : > { %238 = vperm.xlu1 %413, %v219_v3   ;;  %228 = vperm.xlu0 %412, %v217_v4   ;;  %414 = vrcp.f32 %v171_v8  ;;  %s361_s24 = smul.u32 10, %s641_s19  ;;  %s142_s0 = scalar_lea.vmem [#allocation7], %s359_s13 }
  0x4c   : > { %v183_v33 = vstv %s158_s16  ;;  %s284_s27 = sshll.u32 %s142_s0, 4  ;;  %s468_s2 = sshll.u32 %s533_s9, 4  ;;  %s690_s27 = int_to_ptr.vmem [resolvable:$true] %s284_s27  ;;  %s469_s2 = int_to_ptr.vmem [resolvable:$false] %s468_s2 }
  0x4d   : > { %s464_s8 = scalar_lea.vmem %s690_s27, 1280  ;;  %s470_s15 = scalar_lea.vmem %s469_s2, 2560 }
  0x4e   : > { %s355_s25 = sshll.u32 %s643_s22, 1  ;;  %p465_p3 = scmp.ne.s32.totalorder %s690_s27, %s464_s8 }
  0x4f   : > { %243 = vperm.xlu0 %412, %v220_v5   ;;  %s281_s1 = sadd.s32 %s361_s24, %s355_s25  ;;  %p471_p6 = scmp.lt.s32.totalorder %s690_s27, %s469_s2 }
  0x50   : > { %s356_s28 = sshll.u32 %s281_s1, 7  ;;  %p466_p4 = pnand %p465_p3, %p614_p10 }
  0x51   : > { %s695_s6 = scalar_lea.hbm %s741_s5, %s356_s28  ;;  %p472_p7 = scmp.lt.s32.totalorder %s470_s15, %s464_s8 }
  0x52   : > { %p467_p5 = pneg %p466_p4 }
  0x53   : > { %p473_p8 = por %p472_p7, %p471_p6 }
  0x55   : > { %p474_p9 = pnand %p473_p8, %p467_p5 }
  0x58   : > { %v415_v17 = vpop.eup %414 }
  0x59   : > { %v173_v18 = vmul.f32 %v415_v17, %v169_v15  ;;  %v174_v19 = vmul.f32 %v415_v17, %v170_v16 }
  0x5b   : > { %v175_v20 = vfloor.f32 %v173_v18  ;;  %v176_v21 = vfloor.f32 %v174_v19 }
  0x5d   : > { %v177_v22 = vmul.f32 %v175_v20, %v171_v8  ;;  %v178_v23 = vmul.f32 %v176_v21, %v171_v8  ;;  %v186_v31 = vadd.f32 0.5, %v175_v20  ;;  %v187_v32 = vadd.f32 0.5, %v176_v21 }
  0x5f   : > { %v179_v26 = vsub.f32 %v167_v13, %v177_v22  ;;  %v180_v27 = vsub.f32 %v168_v14, %v178_v23  ;;  %v188_v40 = vmul.f32 %v186_v31, %v183_v33  ;;  %v189_v41 = vmul.f32 %v187_v32, %v183_v33 }
  0x61   : > { %v181_v29 = vadd.f32 0.5, %v179_v26  ;;  %v182_v30 = vadd.f32 0.5, %v180_v27 }
  0x63   : > { %v184_v38 = vmul.f32 %v183_v33, %v181_v29  ;;  %v185_v39 = vmul.f32 %v183_v33, %v182_v30 }
  0x65   : > { %v210_v46 = vsel %vm645_vm0, %v184_v38, %v188_v40  ;;  %v211_v47 = vsel %vm645_vm0, %v185_v39, %v189_v41  ;;  %v206_v48 = vsel %vm650_vm1, %v184_v38, %v188_v40  ;;  %v207_v49 = vsel %vm650_vm1, %v185_v39, %v189_v41 }
  0x66   : > { %v212_v59 = vsel %vm664_vm2, %v184_v38, %v188_v40  ;;  %v213_v60 = vsel %vm664_vm2, %v185_v39, %v189_v41  ;;  %v208_v61 = vsel %vm668_vm3, %v184_v38, %v188_v40  ;;  %v209_v62 = vsel %vm668_vm3, %v185_v39, %v189_v41 }
  0x67   : > { %v214_v6 = vsel %vm682_vm4, %v184_v38, %v188_v40  ;;  %v215_v7 = vsel %vm682_vm4, %v185_v39, %v189_v41 }
  0xc2   : > { %v234_v53 = vpop.permute.xlu1 %233  ;;  %v224_v54 = vpop.permute.xlu0 %223 }
  0xc3   : > { %v250_v55 = vadd.f32 %v234_v53, %v210_v46  ;;  %v251_v56 = vadd.f32 %v234_v53, %v211_v47  ;;  %v246_v57 = vadd.f32 %v224_v54, %v206_v48  ;;  %v247_v58 = vadd.f32 %v224_v54, %v207_v49 }
  0xc5   : > { %260 = vst [vmem:[%s142_s0 + $0x20] sm:$0xff] %v250_v55  ;;  %261 = vst [vmem:[%s142_s0 + $0x28] sm:$0xff] %v251_v56 }
  0xc6   : > { %256 = vst [vmem:[%s142_s0] sm:$0xff] %v246_v57  ;;  %257 = vst [vmem:[%s142_s0 + $0x8] sm:$0xff] %v247_v58  ;;  %v239_v0 = vpop.permute.xlu1 %238  ;;  %v229_v1 = vpop.permute.xlu0 %228 }
  0xc7   : > { %v252_v2 = vadd.f32 %v239_v0, %v212_v59  ;;  %v253_v3 = vadd.f32 %v239_v0, %v213_v60  ;;  %v248_v4 = vadd.f32 %v229_v1, %v208_v61  ;;  %v249_v5 = vadd.f32 %v229_v1, %v209_v62 }
  0xc9   : > { %262 = vst [vmem:[%s142_s0 + $0x30] sm:$0xff] %v252_v2  ;;  %263 = vst [vmem:[%s142_s0 + $0x38] sm:$0xff] %v253_v3 }
  0xca   : > { %258 = vst [vmem:[%s142_s0 + $0x10] sm:$0xff] %v248_v4  ;;  %259 = vst [vmem:[%s142_s0 + $0x18] sm:$0xff] %v249_v5  ;;  %v244_v8 = vpop.permute.xlu0 %243 }
  0xcb   : > { %v254_v9 = vadd.f32 %v244_v8, %v214_v6  ;;  %v255_v10 = vadd.f32 %v244_v8, %v215_v7 }
  0xcd   : > { %264 = vst [vmem:[%s142_s0 + $0x40] sm:$0xf] %v254_v9  ;;  %265 = vst [vmem:[%s142_s0 + $0x48] sm:$0xf] %v255_v10 }
  0xce   : > { %477 = shalt.err (!%p474_p9)
}
  0xcf   : > { %s478_s16 = scalar_lea.hbm %s695_s6, 1280  ;;  %s482_s19 = scalar_lea.hbm %s741_s5, 6400 }
  0xd0   : > { %p479_p11 = scmp.ne.s32.totalorder %s695_s6, %s478_s16  ;;  %p483_p1 = scmp.lt.s32.totalorder %s695_s6, %s741_s5 }
  0xd1   : > { %p484_p2 = scmp.lt.s32.totalorder %s482_s19, %s478_s16 }
  0xd2   : > { %p480_p13 = pnand %p479_p11, %p614_p10 }
  0xd3   : > { %p485_p3 = por %p484_p2, %p483_p1 }
  0xd4   : > { %p481_p0 = pneg %p480_p13 }
  0xd6   : > { %p486_p4 = pnand %p485_p3, %p481_p0 }
  0xd8   : > { %489 = shalt.err (!%p486_p4)
}
  0xd9   : > { %s534_s13 = smov 256   ;;  %s535_s24 = smov 16  }
  0xda   : > { %366 = dma.vmem_to_hbm [thread:$0]  (%p614_p10), %s690_s27, 1280, %s695_s6, %s699_s7, %s534_s13, %s534_s13, %s535_s24  }
  0xdb PF: > { %p372_p5 = scmp.ge.s32.totalorder %s526_s12, 2  ;;  %s299_s25 = sand.u32 1, %s514_s3  }
  0xdc   : > { %s300_s0 = scalar_lea.sflag [#allocation8], %s299_s25 }
  0xdd   : > { %p369_p6 = pnand %p372_p5, %p619_p12 }
  0xdf   : > { %p370_p7 = pneg %p369_p6 }
  0xe1   : > { %509 = dma.done.wait (%p370_p7), %s300_s0, 1280  }
  0xe2   : > { %511 = vsyncadd (%p370_p7), %s300_s0, 4294966016  ;;  %p33_p8 = scmp.ge.s32.totalorder %s602_s14, 7   ;;  %s757_s3 = smov %s518_s10 }
  0xe3   : > { %s758_s10 = smov %s522_s11  ;;  %s759_s11 = smov %s626_s26 }
  0xe4   : > { %s760_s12 = smov %s602_s14  ;;  %35 = sbr.rel (!%p33_p8) target bundleno = 49 (0x31), region = 59 }
  0xe9   :  { %305 = vsyncpa [#allocation8], 1 }
  0xea   :  { %307 = vsyncpa [#allocation8 + $0x1], 1 }

</bundles_post_ra>
